<compile_context>
chip_gen: v5e
topology: v5e:2x2
jax: 0.10.0
libtpu: 0.0.40
codegen_flags: <defaults>
</compile_context>

<pallas_src>
import functools

import jax
import jax.numpy as jnp
from jax.experimental import pallas as pl
from jax.experimental.pallas import tpu as pltpu


def gnn_lstm_kernel(x_ref, adj_ref, wg_ref, bg_ref,
                    wigo_ref, bigo_ref, wfc_ref, bfc_ref,
                    out_ref, *, sh):
    """Fused GCN -> zero-state LSTM step -> FC for all timesteps at once.

    sh = S * lstm_hidden_dim (static), the per-gate lane width of the fused
    gate matmul output.
    """
    x = x_ref[...]                                    # (N, S*D)
    adj = adj_ref[...]                                # (N, N)

    # GCN: aggregate over nodes for every timestep in one matmul, then the
    # block-diagonal linear applies W_gcn independently per timestep chunk.
    ax = jnp.dot(adj, x, preferred_element_type=jnp.float32)            # (N, S*D)
    h1 = jnp.dot(ax, wg_ref[...], preferred_element_type=jnp.float32)   # (N, S*G)
    h1 = jnp.maximum(h1 + bg_ref[...], 0.0)

    # Single LSTM step with h0 = c0 = 0: forget gate never contributes.
    # One fused matmul for the i/g/o gates; slices are lane-aligned (sh % 128
    # == 0 for the shapes used here), so splitting is free.
    gates = jnp.dot(h1, wigo_ref[...], preferred_element_type=jnp.float32)
    gates = gates + bigo_ref[...]                     # (N, 3*S*H)
    i_g = jax.nn.sigmoid(gates[:, 0 * sh:1 * sh])
    g_g = jnp.tanh(gates[:, 1 * sh:2 * sh])
    o_g = jax.nn.sigmoid(gates[:, 2 * sh:3 * sh])
    h = o_g * jnp.tanh(i_g * g_g)                     # (N, S*H)

    # Final FC back to dim (block-diagonal over timesteps).
    out = jnp.dot(h, wfc_ref[...], preferred_element_type=jnp.float32) + bfc_ref[...]
    out_ref[...] = out.astype(out_ref.dtype)          # (N, S*D)


@jax.jit
def gnn_lstm_forward(x, adj, params):
    """x: (N, seq, dim) float32, adj: (N, N). Returns (N, seq, dim)."""
    N, S, D = x.shape
    G = params["w_gcn"].shape[0]       # gcn_output_dim
    H = params["w_fc"].shape[1]        # lstm_hidden_dim

    eye_s = jnp.eye(S, dtype=x.dtype)

    # Block-diagonal weights: kron(I_S, W^T) so one matmul covers all S
    # independent timesteps.  Built once in the (jitted) wrapper.
    wg_blk = jnp.kron(eye_s, jnp.transpose(params["w_gcn"]))       # (S*D, S*G)
    w_ih = params["w_ih"]                                          # (4H, G) rows: i,f,g,o
    wi_blk = jnp.kron(eye_s, jnp.transpose(w_ih[0 * H:1 * H]))     # (S*G, S*H)
    wc_blk = jnp.kron(eye_s, jnp.transpose(w_ih[2 * H:3 * H]))     # (S*G, S*H)
    wo_blk = jnp.kron(eye_s, jnp.transpose(w_ih[3 * H:4 * H]))     # (S*G, S*H)
    wigo_blk = jnp.concatenate([wi_blk, wc_blk, wo_blk], axis=1)   # (S*G, 3*S*H)
    wfc_blk = jnp.kron(eye_s, jnp.transpose(params["w_fc"]))       # (S*H, S*D)

    b = params["b_ih"] + params["b_hh"]                            # (4H,)
    bg_t = jnp.tile(params["b_gcn"], S).reshape(1, S * G)
    bigo_t = jnp.concatenate(
        [jnp.tile(b[0 * H:1 * H], S),
         jnp.tile(b[2 * H:3 * H], S),
         jnp.tile(b[3 * H:4 * H], S)]).reshape(1, 3 * S * H)
    bfc_t = jnp.tile(params["b_fc"], S).reshape(1, S * D)

    x_flat = x.reshape(N, S * D)       # free row-major view, no transpose

    # Advisory cost hint for the XLA scheduler around the custom call.
    flops = 2 * (N * N * (S * D)
                 + N * (S * D) * (S * G)
                 + N * (S * G) * (3 * S * H)
                 + N * (S * H) * (S * D))
    transcendentals = 4 * N * S * H
    bytes_accessed = 4 * (x_flat.size + adj.size + wg_blk.size + bg_t.size
                          + wigo_blk.size + bigo_t.size + wfc_blk.size
                          + bfc_t.size + N * S * D)

    vmem = lambda: pl.BlockSpec(memory_space=pltpu.MemorySpace.VMEM)
    out = pl.pallas_call(
        functools.partial(gnn_lstm_kernel, sh=S * H),
        out_shape=jax.ShapeDtypeStruct((N, S * D), x.dtype),
        in_specs=[vmem() for _ in range(8)],
        out_specs=vmem(),
        cost_estimate=pl.CostEstimate(flops=flops,
                                      transcendentals=transcendentals,
                                      bytes_accessed=bytes_accessed),
    )(x_flat, adj, wg_blk, bg_t, wigo_blk, bigo_t, wfc_blk, bfc_t)

    return out.reshape(N, S, D)        # free view back to (N, seq, dim)


def reference_forward(x, adj, params):
    """Pure-JAX reference mirroring the PyTorch forward pass."""
    N, S, D = x.shape
    H = params["w_fc"].shape[1]
    b = params["b_ih"] + params["b_hh"]
    outs = []
    for t in range(S):
        x_t = x[:, t, :]
        h1 = jnp.maximum(adj @ x_t @ params["w_gcn"].T + params["b_gcn"], 0.0)
        gates = h1 @ params["w_ih"].T + b
        i_g = jax.nn.sigmoid(gates[:, 0 * H:1 * H])
        g_g = jnp.tanh(gates[:, 2 * H:3 * H])
        o_g = jax.nn.sigmoid(gates[:, 3 * H:4 * H])
        h = o_g * jnp.tanh(i_g * g_g)
        outs.append(h @ params["w_fc"].T + params["b_fc"])
    return jnp.stack(outs, axis=1)


def init_params(key, dim, lstm_hidden_dim, gcn_output_dim):
    """Deterministic, PyTorch-shaped parameter init (uniform, scaled)."""
    ks = jax.random.split(key, 7)

    def u(k, shape, scale):
        return jax.random.uniform(k, shape, jnp.float32, -scale, scale)

    H = lstm_hidden_dim
    return {
        # nn.Linear(dim, gcn_output_dim)
        "w_gcn": u(ks[0], (gcn_output_dim, dim), 1.0 / dim ** 0.5),
        "b_gcn": u(ks[1], (gcn_output_dim,), 1.0 / dim ** 0.5),
        # nn.LSTM(gcn_output_dim, lstm_hidden_dim): weight_ih_l0 and biases
        "w_ih": u(ks[2], (4 * H, gcn_output_dim), 1.0 / H ** 0.5),
        "b_ih": u(ks[3], (4 * H,), 1.0 / H ** 0.5),
        "b_hh": u(ks[4], (4 * H,), 1.0 / H ** 0.5),
        # nn.Linear(lstm_hidden_dim, dim)
        "w_fc": u(ks[5], (dim, H), 1.0 / H ** 0.5),
        "b_fc": u(ks[6], (dim,), 1.0 / H ** 0.5),
    }


if __name__ == "__main__":
    N, SEQ, DIM = 8, 4, 16          # nodes ("batch"), seq_len, feature dim
    GCN_OUT, LSTM_H = 32, 32        # S*G = S*H = 128 lanes -> aligned slices

    key = jax.random.PRNGKey(0)
    k_x, k_adj, k_p = jax.random.split(key, 3)

    x = jax.random.normal(k_x, (N, SEQ, DIM), jnp.float32)
    adj = jax.random.uniform(k_adj, (N, N), jnp.float32)
    params = init_params(k_p, DIM, LSTM_H, GCN_OUT)

    out = gnn_lstm_forward(x, adj, params)
    out = jax.block_until_ready(out)

    ref = reference_forward(x, adj, params)
    assert out.shape == (N, SEQ, DIM)
    assert jnp.allclose(out, ref, atol=1e-5, rtol=1e-5), (
        f"max err = {jnp.max(jnp.abs(out - ref))}")

    print("KERNEL_OK")
</pallas_src>

<mosaic_0001>
module attributes {stable_mosaic.version = 11 : i64} {
  func.func @gnn_lstm_kernel(%arg0: memref<8x64xf32, #tpu.memory_space<vmem>>, %arg1: memref<8x8xf32, #tpu.memory_space<vmem>>, %arg2: memref<64x128xf32, #tpu.memory_space<vmem>>, %arg3: memref<1x128xf32, #tpu.memory_space<vmem>>, %arg4: memref<128x384xf32, #tpu.memory_space<vmem>>, %arg5: memref<1x384xf32, #tpu.memory_space<vmem>>, %arg6: memref<128x64xf32, #tpu.memory_space<vmem>>, %arg7: memref<1x64xf32, #tpu.memory_space<vmem>>, %arg8: memref<8x64xf32, #tpu.memory_space<vmem>>) attributes {dimension_semantics = [], scalar_prefetch = 0 : i64, scratch_operands = 0 : i64, tpu.core_type = #tpu.core_type<tc>} {
    %c0 = arith.constant 0 : index
    %c0_0 = arith.constant 0 : index
    %0 = vector.load %arg0[%c0, %c0_0] : memref<8x64xf32, #tpu.memory_space<vmem>>, vector<8x64xf32>
    %c0_1 = arith.constant 0 : index
    %c0_2 = arith.constant 0 : index
    %1 = vector.load %arg1[%c0_1, %c0_2] : memref<8x8xf32, #tpu.memory_space<vmem>>, vector<8x8xf32>
    %cst = arith.constant dense<0.000000e+00> : vector<8x64xf32>
    %2 = tpu.matmul %1, %0, %cst {dimension_numbers = #tpu.dot_dimension_numbers<[1], [0], [0], [1], [0, 0, 1, 1], [], []>} : vector<8x8xf32>, vector<8x64xf32>, vector<8x64xf32> -> vector<8x64xf32>
    %c0_3 = arith.constant 0 : index
    %c0_4 = arith.constant 0 : index
    %3 = vector.load %arg2[%c0_3, %c0_4] : memref<64x128xf32, #tpu.memory_space<vmem>>, vector<64x128xf32>
    %cst_5 = arith.constant dense<0.000000e+00> : vector<8x128xf32>
    %4 = tpu.matmul %2, %3, %cst_5 {dimension_numbers = #tpu.dot_dimension_numbers<[1], [0], [0], [1], [0, 0, 1, 1], [], []>} : vector<8x64xf32>, vector<64x128xf32>, vector<8x128xf32> -> vector<8x128xf32>
    %c0_6 = arith.constant 0 : index
    %c0_7 = arith.constant 0 : index
    %5 = vector.load %arg3[%c0_6, %c0_7] : memref<1x128xf32, #tpu.memory_space<vmem>>, vector<1x128xf32>
    %6 = vector.broadcast %5 : vector<1x128xf32> to vector<8x128xf32>
    %7 = arith.addf %4, %6 : vector<8x128xf32>
    %cst_8 = arith.constant 0.000000e+00 : f32
    %8 = vector.broadcast %cst_8 : f32 to vector<8x128xf32>
    %9 = arith.maximumf %7, %8 : vector<8x128xf32>
    %c0_9 = arith.constant 0 : index
    %c0_10 = arith.constant 0 : index
    %10 = vector.load %arg4[%c0_9, %c0_10] : memref<128x384xf32, #tpu.memory_space<vmem>>, vector<128x384xf32>
    %cst_11 = arith.constant dense<0.000000e+00> : vector<8x384xf32>
    %11 = tpu.matmul %9, %10, %cst_11 {dimension_numbers = #tpu.dot_dimension_numbers<[1], [0], [0], [1], [0, 0, 1, 1], [], []>} : vector<8x128xf32>, vector<128x384xf32>, vector<8x384xf32> -> vector<8x384xf32>
    %c0_12 = arith.constant 0 : index
    %c0_13 = arith.constant 0 : index
    %12 = vector.load %arg5[%c0_12, %c0_13] : memref<1x384xf32, #tpu.memory_space<vmem>>, vector<1x384xf32>
    %13 = vector.broadcast %12 : vector<1x384xf32> to vector<8x384xf32>
    %14 = arith.addf %11, %13 : vector<8x384xf32>
    %15 = vector.extract_strided_slice %14 {offsets = [0, 0], sizes = [8, 128], strides = [1, 1]} : vector<8x384xf32> to vector<8x128xf32>
    %16 = arith.negf %15 : vector<8x128xf32>
    %17 = math.exp %16 : vector<8x128xf32>
    %cst_14 = arith.constant 1.000000e+00 : f32
    %18 = vector.broadcast %cst_14 : f32 to vector<8x128xf32>
    %19 = arith.addf %18, %17 : vector<8x128xf32>
    %20 = arith.divf %18, %19 : vector<8x128xf32>
    %21 = vector.extract_strided_slice %14 {offsets = [0, 128], sizes = [8, 128], strides = [1, 1]} : vector<8x384xf32> to vector<8x128xf32>
    %22 = math.tanh %21 : vector<8x128xf32>
    %23 = vector.extract_strided_slice %14 {offsets = [0, 256], sizes = [8, 128], strides = [1, 1]} : vector<8x384xf32> to vector<8x128xf32>
    %24 = arith.negf %23 : vector<8x128xf32>
    %25 = math.exp %24 : vector<8x128xf32>
    %cst_15 = arith.constant 1.000000e+00 : f32
    %26 = vector.broadcast %cst_15 : f32 to vector<8x128xf32>
    %27 = arith.addf %26, %25 : vector<8x128xf32>
    %28 = arith.divf %26, %27 : vector<8x128xf32>
    %29 = arith.mulf %20, %22 : vector<8x128xf32>
    %30 = math.tanh %29 : vector<8x128xf32>
    %31 = arith.mulf %28, %30 : vector<8x128xf32>
    %c0_16 = arith.constant 0 : index
    %c0_17 = arith.constant 0 : index
    %32 = vector.load %arg6[%c0_16, %c0_17] : memref<128x64xf32, #tpu.memory_space<vmem>>, vector<128x64xf32>
    %cst_18 = arith.constant dense<0.000000e+00> : vector<8x64xf32>
    %33 = tpu.matmul %31, %32, %cst_18 {dimension_numbers = #tpu.dot_dimension_numbers<[1], [0], [0], [1], [0, 0, 1, 1], [], []>} : vector<8x128xf32>, vector<128x64xf32>, vector<8x64xf32> -> vector<8x64xf32>
    %c0_19 = arith.constant 0 : index
    %c0_20 = arith.constant 0 : index
    %34 = vector.load %arg7[%c0_19, %c0_20] : memref<1x64xf32, #tpu.memory_space<vmem>>, vector<1x64xf32>
    %35 = vector.broadcast %34 : vector<1x64xf32> to vector<8x64xf32>
    %36 = arith.addf %33, %35 : vector<8x64xf32>
    %c0_21 = arith.constant 0 : index
    %c0_22 = arith.constant 0 : index
    %37 = vector.load %arg8[%c0_21, %c0_22] : memref<8x64xf32, #tpu.memory_space<vmem>>, vector<8x64xf32>
    tpu.vector_store %arg8[%c0_21, %c0_22], %36 {strides = array<i32>} : memref<8x64xf32, #tpu.memory_space<vmem>>, vector<8x64xf32>,
    return
  }
}

</mosaic_0001>

<bundles_post_ra>
// kernel: tile.33
= control target key start
LH: loop header
LB: loop body
LE: loop exit
PB: predicated region body
PF: predicated region fallthrough
CT: control target
= control target key end

     0   :  { %s22_s0 = inlined_call_operand.vmem [shape: f32[32], index: 0, kind: input, shape index: {}]   ;;  %s23_s1 = inlined_call_operand.vmem [shape: f32[4,32], index: 1, kind: output, shape index: {}]  }
   0x1   :  { %v4_v0 = vld [vmem:[%s22_s0] ss:$0 sm:$0xff] }
   0x2   :  { %5 = vst [vmem:[%s23_s1] sm:$0xf] %v4_v0 }

// kernel: tile.34
= control target key start
LH: loop header
LB: loop body
LE: loop exit
PB: predicated region body
PF: predicated region fallthrough
CT: control target
= control target key end

     0   :  { %s37_s8 = smov 32   ;;  %s38_s9 = smov 64   ;;  %vm7_vm0 = vcmask 261120   ;;  %vm13_vm1 = vcmask 1048320   ;;  %vm19_vm2 = vcmask 785920   ;;  %vm25_vm3 = vcmask 523520   ;;  %s55_s0 = inlined_call_operand.vmem [shape: f32[4,32], index: 0, kind: input, shape index: {}]   ;;  %s56_s1 = inlined_call_operand.vmem [shape: f32[128], index: 1, kind: output, shape index: {}]  }
   0x1   :  { %v4_v0 = vld [vmem:[%s55_s0] sm:$0xf]  ;;  %s36_s0 = smov 96  }
   0x2   :  { %5 = vst [vmem:[#allocation1] sm:$0xf] %v4_v0 }
   0x9   :  { %v10_v1 = vld [vmem:[#allocation1 + $0x3] sm:$0x1]   ;;  %v22_v2 = vld [vmem:[#allocation1 + $0x1] sm:$0x1]   ;;  %v16_v3 = vld [vmem:[#allocation1 + $0x2] sm:$0x1]  }
   0xa   :  { %11 = vrot.lane.b32.xlu0 %v10_v1, %s36_s0  ;;  %23 = vrot.lane.b32.xlu1 %v22_v2, %s37_s8  ;;  %v6_v4 = vld [vmem:[#allocation1] sm:$0x1]  }
   0xb   :  { %8 = vst.msk [vmem:[#allocation0] sm:$0x1] %vm7_vm0, %v6_v4  }
  0x12   :  { %17 = vrot.lane.b32.xlu0 %v16_v3, %s38_s9 }
  0x7c   :  { %v12_v5 = vpop.permute.xlu0 %11   ;;  %v24_v6 = vpop.permute.xlu1 %23  }
  0x7d   :  { %14 = vst.msk [vmem:[#allocation0] sm:$0x1] %vm13_vm1, %v12_v5  }
  0x84   :  { %v18_v7 = vpop.permute.xlu0 %17  }
  0x85   :  { %20 = vst.msk [vmem:[#allocation0] sm:$0x1] %vm19_vm2, %v18_v7  }
  0x86   :  { %26 = vst.msk [vmem:[#allocation0] sm:$0x1] %vm25_vm3, %v24_v6  }
  0x8d   :  { %v29_v8 = vld [vmem:[#allocation0] sm:$0x1] }
  0x8e   :  { %32 = vst [vmem:[%s56_s1] sm:$0x1] %v29_v8 }

// kernel: tile.29
= control target key start
LH: loop header
LB: loop body
LE: loop exit
PB: predicated region body
PF: predicated region fallthrough
CT: control target
= control target key end

     0   :  { %s37_s8 = smov 32   ;;  %s38_s9 = smov 64   ;;  %vm7_vm0 = vcmask 261120   ;;  %vm13_vm1 = vcmask 1048320   ;;  %vm19_vm2 = vcmask 785920   ;;  %vm25_vm3 = vcmask 523520   ;;  %s55_s0 = inlined_call_operand.vmem [shape: f32[4,32], index: 0, kind: input, shape index: {}]   ;;  %s56_s1 = inlined_call_operand.vmem [shape: f32[1,128], index: 1, kind: output, shape index: {}]  }
   0x1   :  { %v4_v0 = vld [vmem:[%s55_s0] sm:$0xf]  ;;  %s36_s0 = smov 96  }
   0x2   :  { %5 = vst [vmem:[#allocation1] sm:$0xf] %v4_v0 }
   0x9   :  { %v10_v1 = vld [vmem:[#allocation1 + $0x3] sm:$0x1]   ;;  %v22_v2 = vld [vmem:[#allocation1 + $0x1] sm:$0x1]   ;;  %v16_v3 = vld [vmem:[#allocation1 + $0x2] sm:$0x1]  }
   0xa   :  { %11 = vrot.lane.b32.xlu0 %v10_v1, %s36_s0  ;;  %23 = vrot.lane.b32.xlu1 %v22_v2, %s37_s8  ;;  %v6_v4 = vld [vmem:[#allocation1] sm:$0x1]  }
   0xb   :  { %8 = vst.msk [vmem:[#allocation0] sm:$0x1] %vm7_vm0, %v6_v4  }
  0x12   :  { %17 = vrot.lane.b32.xlu0 %v16_v3, %s38_s9 }
  0x7c   :  { %v12_v5 = vpop.permute.xlu0 %11   ;;  %v24_v6 = vpop.permute.xlu1 %23  }
  0x7d   :  { %14 = vst.msk [vmem:[#allocation0] sm:$0x1] %vm13_vm1, %v12_v5  }
  0x84   :  { %v18_v7 = vpop.permute.xlu0 %17  }
  0x85   :  { %20 = vst.msk [vmem:[#allocation0] sm:$0x1] %vm19_vm2, %v18_v7  }
  0x86   :  { %26 = vst.msk [vmem:[#allocation0] sm:$0x1] %vm25_vm3, %v24_v6  }
  0x8d   :  { %v29_v8 = vld [vmem:[#allocation0] sm:$0x1] }
  0x8e   :  { %32 = vst [vmem:[%s56_s1] sm:$0x1] %v29_v8 }

// kernel: tile.48
= control target key start
LH: loop header
LB: loop body
LE: loop exit
PB: predicated region body
PF: predicated region fallthrough
CT: control target
= control target key end

     0   :  { %s22_s0 = inlined_call_operand.vmem [shape: f32[16], index: 0, kind: input, shape index: {}]   ;;  %s23_s1 = inlined_call_operand.vmem [shape: f32[4,16], index: 1, kind: output, shape index: {}]  }
   0x1   :  { %v4_v0 = vld [vmem:[%s22_s0] ss:$0 sm:$0xff] }
   0x2   :  { %5 = vst [vmem:[%s23_s1] sm:$0xf] %v4_v0 }

// kernel: tile.49
= control target key start
LH: loop header
LB: loop body
LE: loop exit
PB: predicated region body
PF: predicated region fallthrough
CT: control target
= control target key end

     0   :  { %s37_s8 = smov 16   ;;  %s38_s9 = smov 32   ;;  %vm7_vm0 = vcmask 130048   ;;  %vm13_vm1 = vcmask 523648   ;;  %vm19_vm2 = vcmask 392448   ;;  %vm25_vm3 = vcmask 261248   ;;  %s55_s0 = inlined_call_operand.vmem [shape: f32[4,16], index: 0, kind: input, shape index: {}]   ;;  %s56_s1 = inlined_call_operand.vmem [shape: f32[1,64], index: 1, kind: output, shape index: {}]  }
   0x1   :  { %v4_v0 = vld [vmem:[%s55_s0] sm:$0xf]  ;;  %s36_s0 = smov 48  }
   0x2   :  { %5 = vst [vmem:[#allocation1] sm:$0xf] %v4_v0 }
   0x9   :  { %v10_v1 = vld [vmem:[#allocation1 + $0x3] sm:$0x1]   ;;  %v22_v2 = vld [vmem:[#allocation1 + $0x1] sm:$0x1]   ;;  %v16_v3 = vld [vmem:[#allocation1 + $0x2] sm:$0x1]  }
   0xa   :  { %11 = vrot.lane.b32.xlu0 %v10_v1, %s36_s0  ;;  %23 = vrot.lane.b32.xlu1 %v22_v2, %s37_s8  ;;  %v6_v4 = vld [vmem:[#allocation1] sm:$0x1]  }
   0xb   :  { %8 = vst.msk [vmem:[#allocation0] sm:$0x1] %vm7_vm0, %v6_v4  }
  0x12   :  { %17 = vrot.lane.b32.xlu0 %v16_v3, %s38_s9 }
  0x7c   :  { %v12_v5 = vpop.permute.xlu0 %11   ;;  %v24_v6 = vpop.permute.xlu1 %23  }
  0x7d   :  { %14 = vst.msk [vmem:[#allocation0] sm:$0x1] %vm13_vm1, %v12_v5  }
  0x84   :  { %v18_v7 = vpop.permute.xlu0 %17  }
  0x85   :  { %20 = vst.msk [vmem:[#allocation0] sm:$0x1] %vm19_vm2, %v18_v7  }
  0x86   :  { %26 = vst.msk [vmem:[#allocation0] sm:$0x1] %vm25_vm3, %v24_v6  }
  0x8d   :  { %v29_v8 = vld [vmem:[#allocation0] sm:$0x1] }
  0x8e   :  { %32 = vst [vmem:[%s56_s1] sm:$0x1] %v29_v8 }

// kernel: gnn_lstm_forward.1
= control target key start
LH: loop header
LB: loop body
LE: loop exit
PB: predicated region body
PF: predicated region fallthrough
CT: control target
= control target key end

     0   :  { %vm31_vm0 = vcmask 64512   ;;  %vm67_vm1 = vcmask 523264   ;;  %s594_s0 = inlined_call_operand.vmem [shape: f32[8,64], index: 0, kind: input, shape index: {}]   ;;  %s595_s1 = inlined_call_operand.vmem [shape: f32[8,8], index: 1, kind: input, shape index: {}]   ;;  %s596_s2 = inlined_call_operand.vmem [shape: f32[64,128], index: 2, kind: input, shape index: {}]   ;;  %s597_s3 = inlined_call_operand.vmem [shape: f32[1,128], index: 3, kind: input, shape index: {}]   ;;  %s598_s4 = inlined_call_operand.vmem [shape: f32[128,384], index: 4, kind: input, shape index: {}]   ;;  %s599_s7 = inlined_call_operand.vmem [shape: f32[1,64], index: 7, kind: input, shape index: {}]   ;;  %s600_s6 = inlined_call_operand.vmem [shape: f32[128,64], index: 6, kind: input, shape index: {}]   ;;  %s601_s5 = inlined_call_operand.vmem [shape: f32[1,384], index: 5, kind: input, shape index: {}]   ;;  %s602_s8 = inlined_call_operand.vmem [shape: f32[8,64], index: 8, kind: output, shape index: {}]  }
   0x1   :  { %v29_v0 = vld [vmem:[%s594_s0] sm:$0xff]  ;;  %v62_v2 = vld [vmem:[%s596_s2 + $0x38] sm:$0xff]  ;;  %v61_v3 = vld [vmem:[%s596_s2 + $0x30] sm:$0xff] }
   0x2   :  { %v30_v1 = vld [vmem:[%s595_s1] sm:$0xff]  ;;  %50 = vmatpush.msra.mxu0 %v29_v0  ;;  %79 = vmatpush.msra.mxu1 %v62_v2  ;;  %v60_v4 = vld [vmem:[%s596_s2 + $0x28] sm:$0xff]  ;;  %v58_v6 = vld [vmem:[%s596_s2 + $0x18] sm:$0xff] }
   0x3   :  { %295 = vmatmul.msk.f32.vlgmr.msra.gmra.mxu0 %vm31_vm0, %v30_v1  ;;  %v59_v5 = vld [vmem:[%s596_s2 + $0x20] sm:$0xff]  ;;  %v57_v7 = vld [vmem:[%s596_s2 + $0x10] sm:$0xff]  ;;  %v56_v8 = vld [vmem:[%s596_s2 + $0x8] sm:$0xff] }
   0x4   :  { %80 = vmatpush.msra.mxu1 %v61_v3  ;;  %v55_v9 = vld [vmem:[%s596_s2] sm:$0xff]  ;;  %v137_v10 = vld [vmem:[%s598_s4 + $0x168] sm:$0xff]  ;;  %v138_v11 = vld [vmem:[%s598_s4 + $0x170] sm:$0xff] }
   0x5   :  { %v139_v12 = vld [vmem:[%s598_s4 + $0x178] sm:$0xff]  ;;  %148 = vmatpush.msra.mxu2 %v137_v10  ;;  %168 = vmatpush.msra.mxu3 %v138_v11  ;;  %v134_v13 = vld [vmem:[%s598_s4 + $0x150] sm:$0xff]  ;;  %v136_v15 = vld [vmem:[%s598_s4 + $0x160] sm:$0xff] }
   0x6   :  { %81 = vmatpush.msra.mxu1 %v60_v4  ;;  %v135_v14 = vld [vmem:[%s598_s4 + $0x158] sm:$0xff]  ;;  %188 = vmatpush.msrb.mxu0 %v139_v12  ;;  %v132_v17 = vld [vmem:[%s598_s4 + $0x140] sm:$0xff]  ;;  %v133_v18 = vld [vmem:[%s598_s4 + $0x148] sm:$0xff] }
   0x7   :  { %v131_v16 = vld [vmem:[%s598_s4 + $0x138] sm:$0xff]  ;;  %149 = vmatpush.msra.mxu2 %v134_v13  ;;  %169 = vmatpush.msra.mxu3 %v135_v14  ;;  %v128_v19 = vld [vmem:[%s598_s4 + $0x120] sm:$0xff]  ;;  %v129_v20 = vld [vmem:[%s598_s4 + $0x128] sm:$0xff] }
   0x8   :  { %82 = vmatpush.msra.mxu1 %v59_v5  ;;  %189 = vmatpush.msrb.mxu0 %v136_v15  ;;  %v130_v21 = vld [vmem:[%s598_s4 + $0x130] sm:$0xff]  ;;  %v125_v22 = vld [vmem:[%s598_s4 + $0x108] sm:$0xff]  ;;  %v127_v24 = vld [vmem:[%s598_s4 + $0x118] sm:$0xff] }
   0x9   :  { %150 = vmatpush.msra.mxu2 %v131_v16  ;;  %170 = vmatpush.msra.mxu3 %v132_v17  ;;  %v126_v23 = vld [vmem:[%s598_s4 + $0x110] sm:$0xff]  ;;  %v123_v26 = vld [vmem:[%s598_s4 + $0xf8] sm:$0xff]  ;;  %v124_v27 = vld [vmem:[%s598_s4 + $0x100] sm:$0xff] }
   0xa   :  { %83 = vmatpush.msra.mxu1 %v58_v6  ;;  %190 = vmatpush.msrb.mxu0 %v133_v18  ;;  %v122_v25 = vld [vmem:[%s598_s4 + $0xf0] sm:$0xff]  ;;  %v119_v28 = vld [vmem:[%s598_s4 + $0xd8] sm:$0xff]  ;;  %v120_v29 = vld [vmem:[%s598_s4 + $0xe0] sm:$0xff] }
   0xb   :  { %151 = vmatpush.msra.mxu2 %v128_v19  ;;  %171 = vmatpush.msra.mxu3 %v129_v20  ;;  %v121_v30 = vld [vmem:[%s598_s4 + $0xe8] sm:$0xff]  ;;  %v116_v31 = vld [vmem:[%s598_s4 + $0xc0] sm:$0xff]  ;;  %v118_v33 = vld [vmem:[%s598_s4 + $0xd0] sm:$0xff] }
   0xc   :  { %84 = vmatpush.msra.mxu1 %v57_v7  ;;  %191 = vmatpush.msrb.mxu0 %v130_v21  ;;  %v117_v32 = vld [vmem:[%s598_s4 + $0xc8] sm:$0xff]  ;;  %v114_v35 = vld [vmem:[%s598_s4 + $0xb0] sm:$0xff]  ;;  %v115_v36 = vld [vmem:[%s598_s4 + $0xb8] sm:$0xff] }
   0xd   :  { %152 = vmatpush.msra.mxu2 %v125_v22  ;;  %172 = vmatpush.msra.mxu3 %v126_v23  ;;  %v113_v34 = vld [vmem:[%s598_s4 + $0xa8] sm:$0xff]  ;;  %v110_v37 = vld [vmem:[%s598_s4 + $0x90] sm:$0xff]  ;;  %v111_v38 = vld [vmem:[%s598_s4 + $0x98] sm:$0xff] }
   0xe   :  { %85 = vmatpush.msra.mxu1 %v56_v8  ;;  %192 = vmatpush.msrb.mxu0 %v127_v24  ;;  %v112_v39 = vld [vmem:[%s598_s4 + $0xa0] sm:$0xff]  ;;  %v107_v40 = vld [vmem:[%s598_s4 + $0x78] sm:$0xff]  ;;  %v109_v42 = vld [vmem:[%s598_s4 + $0x88] sm:$0xff] }
   0xf   :  { %153 = vmatpush.msra.mxu2 %v122_v25  ;;  %173 = vmatpush.msra.mxu3 %v123_v26  ;;  %v108_v41 = vld [vmem:[%s598_s4 + $0x80] sm:$0xff]  ;;  %v105_v44 = vld [vmem:[%s598_s4 + $0x68] sm:$0xff]  ;;  %v106_v45 = vld [vmem:[%s598_s4 + $0x70] sm:$0xff] }
  0x10   :  { %86 = vmatpush.msra.mxu1 %v55_v9  ;;  %193 = vmatpush.msrb.mxu0 %v124_v27  ;;  %v104_v43 = vld [vmem:[%s598_s4 + $0x60] sm:$0xff]  ;;  %v101_v46 = vld [vmem:[%s598_s4 + $0x48] sm:$0xff]  ;;  %v102_v47 = vld [vmem:[%s598_s4 + $0x50] sm:$0xff] }
  0x11   :  { %154 = vmatpush.msra.mxu2 %v119_v28  ;;  %174 = vmatpush.msra.mxu3 %v120_v29  ;;  %v103_v48 = vld [vmem:[%s598_s4 + $0x58] sm:$0xff]  ;;  %v98_v50 = vld [vmem:[%s598_s4 + $0x30] sm:$0xff]  ;;  %v100_v52 = vld [vmem:[%s598_s4 + $0x40] sm:$0xff] }
  0x12   :  { %194 = vmatpush.msrb.mxu0 %v121_v30  ;;  %v99_v51 = vld [vmem:[%s598_s4 + $0x38] sm:$0xff]  ;;  %v96_v54 = vld [vmem:[%s598_s4 + $0x20] sm:$0xff]  ;;  %v97_v55 = vld [vmem:[%s598_s4 + $0x28] sm:$0xff] }
  0x13   :  { %155 = vmatpush.msra.mxu2 %v116_v31  ;;  %175 = vmatpush.msra.mxu3 %v117_v32  ;;  %v95_v53 = vld [vmem:[%s598_s4 + $0x18] sm:$0xff]  ;;  %v92_v56 = vld [vmem:[%s598_s4] sm:$0xff]  ;;  %v93_v57 = vld [vmem:[%s598_s4 + $0x8] sm:$0xff] }
  0x14   :  { %195 = vmatpush.msrb.mxu0 %v118_v33  ;;  %v94_v58 = vld [vmem:[%s598_s4 + $0x10] sm:$0xff]  ;;  %v299_v59 = vld [vmem:[%s597_s3] ss:$0 sm:$0xff]  ;;  %v265_v63 = vld [vmem:[%s600_s6 + $0x78] sm:$0xff] }
  0x15   :  { %156 = vmatpush.msra.mxu2 %v113_v34  ;;  %176 = vmatpush.msra.mxu3 %v114_v35  ;;  %v264_v0 = vld [vmem:[%s600_s6 + $0x70] sm:$0xff]  ;;  %v263_v1 = vld [vmem:[%s600_s6 + $0x68] sm:$0xff]  ;;  %v262_v2 = vld [vmem:[%s600_s6 + $0x60] sm:$0xff] }
  0x16   :  { %196 = vmatpush.msrb.mxu0 %v115_v36  ;;  %270 = vmatpush.msrb.mxu1 %v265_v63  ;;  %v261_v3 = vld [vmem:[%s600_s6 + $0x58] sm:$0xff]  ;;  %v140_v4 = vld [vmem:[%s601_s5] sm:$0x7]  ;;  %v260_v5 = vld [vmem:[%s600_s6 + $0x50] sm:$0xff] }
  0x17   :  { %157 = vmatpush.msra.mxu2 %v110_v37  ;;  %177 = vmatpush.msra.mxu3 %v111_v38  ;;  %v259_v6 = vld [vmem:[%s600_s6 + $0x48] sm:$0xff]  ;;  %v144_v7 = vperm.slane %v140_v4, 2  ;;  %v258_v8 = vld [vmem:[%s600_s6 + $0x40] sm:$0xff]  ;;  %v257_v10 = vld [vmem:[%s600_s6 + $0x38] sm:$0xff]  ;;  %v142_v12 = vperm.slane %v140_v4, 0  ;;  %v143_v28 = vperm.slane %v140_v4, 1 }
  0x18   :  { %197 = vmatpush.msrb.mxu0 %v112_v39  ;;  %271 = vmatpush.msrb.mxu1 %v264_v0  ;;  %v256_v13 = vld [vmem:[%s600_s6 + $0x30] sm:$0xff]  ;;  %v255_v15 = vld [vmem:[%s600_s6 + $0x28] sm:$0xff]  ;;  %v254_v18 = vld [vmem:[%s600_s6 + $0x20] sm:$0xff] }
  0x19   :  { %158 = vmatpush.msra.mxu2 %v107_v40  ;;  %178 = vmatpush.msra.mxu3 %v108_v41  ;;  %v253_v19 = vld [vmem:[%s600_s6 + $0x18] sm:$0xff]  ;;  %v252_v21 = vld [vmem:[%s600_s6 + $0x10] sm:$0xff]  ;;  %v251_v22 = vld [vmem:[%s600_s6 + $0x8] sm:$0xff] }
  0x1a   :  { %198 = vmatpush.msrb.mxu0 %v109_v42  ;;  %272 = vmatpush.msrb.mxu1 %v263_v1  ;;  %v250_v25 = vld [vmem:[%s600_s6] sm:$0xff] }
  0x1b   :  { %159 = vmatpush.msra.mxu2 %v104_v43  ;;  %179 = vmatpush.msra.mxu3 %v105_v44 }
  0x1c   :  { %199 = vmatpush.msrb.mxu0 %v106_v45  ;;  %273 = vmatpush.msrb.mxu1 %v262_v2 }
  0x1d   :  { %160 = vmatpush.msra.mxu2 %v101_v46  ;;  %180 = vmatpush.msra.mxu3 %v102_v47 }
  0x1e   :  { %200 = vmatpush.msrb.mxu0 %v103_v48  ;;  %274 = vmatpush.msrb.mxu1 %v261_v3 }
  0x1f   :  { %161 = vmatpush.msra.mxu2 %v98_v50  ;;  %181 = vmatpush.msra.mxu3 %v99_v51 }
  0x20   :  { %201 = vmatpush.msrb.mxu0 %v100_v52  ;;  %275 = vmatpush.msrb.mxu1 %v260_v5 }
  0x21   :  { %162 = vmatpush.msra.mxu2 %v95_v53  ;;  %182 = vmatpush.msra.mxu3 %v96_v54 }
  0x22   :  { %202 = vmatpush.msrb.mxu0 %v97_v55  ;;  %276 = vmatpush.msrb.mxu1 %v259_v6  ;;  %v300_v55 = vld [vmem:[%s599_s7] ss:$0 sm:$0xff] }
  0x23   :  { %163 = vmatpush.msra.mxu2 %v92_v56  ;;  %183 = vmatpush.msra.mxu3 %v93_v57 }
  0x24   :  { %203 = vmatpush.msrb.mxu0 %v94_v58  ;;  %277 = vmatpush.msrb.mxu1 %v258_v8 }
  0x26   :  { %278 = vmatpush.msrb.mxu1 %v257_v10 }
  0x28   :  { %279 = vmatpush.msrb.mxu1 %v256_v13 }
  0x2a   :  { %280 = vmatpush.msrb.mxu1 %v255_v15 }
  0x2c   :  { %281 = vmatpush.msrb.mxu1 %v254_v18 }
  0x2e   :  { %282 = vmatpush.msrb.mxu1 %v253_v19 }
  0x30   :  { %283 = vmatpush.msrb.mxu1 %v252_v21 }
  0x32   :  { %284 = vmatpush.msrb.mxu1 %v251_v22 }
  0x34   :  { %285 = vmatpush.msrb.mxu1 %v250_v25 }
  0x80   :  { %v52_v49 = vpop.f32.mrf.mxu0 }
  0x81   :  { %296 = vmatmul.msk.f32.vlgmr.msra.gmra.mxu1 %vm67_vm1, %v52_v49 }
  0xfe   :  { %v88_v60 = vpop.f32.mrf.mxu1 }
  0xff   :  { %v89_v61 = vadd.f32 %v299_v59, %v88_v60 }
 0x101   :  { %v91_v62 = vmax.f32 %v89_v61, 0.0 }
 0x103   :  { %164 = vmatmul.f32.vlgmr.msra.gmra.mxu2 %v91_v62  ;;  %184 = vmatmul.f32.vlgmr.msra.gmra.mxu3 %v91_v62 }
 0x104   :  { %204 = vmatmul.f32.vlgmr.msrb.gmra.mxu0 %v91_v62 }
 0x181   :  { %v205_v9 = vpop.f32.mrf.mxu0 }
 0x182   :  { %v206_v11 = vadd.f32 %v205_v9, %v144_v7 }
 0x184   :  { %v298_v14 = vmul.f32 -1.442695, %v206_v11 }
 0x186   :  { %301 = vpow2.f32 %v298_v14  ;;  %v165_v16 = vpop.f32.mrf.mxu2  ;;  %v185_v30 = vpop.f32.mrf.mxu3 }
 0x187   :  { %v166_v17 = vadd.f32 %v165_v16, %v142_v12  ;;  %v186_v33 = vadd.f32 %v185_v30, %v143_v28 }
 0x189   :  { %v297_v20 = vmul.f32 -1.442695, %v166_v17 }
 0x18b   :  { %303 = vpow2.f32 %v297_v20 }
 0x18c   :  { %v302_v23 = vpop.eup %301 }
 0x18d   :  { %v231_v24 = vadd.f32 1.0, %v302_v23 }
 0x18f   :  { %305 = vrcp.f32 %v231_v24  ;;  %v243_v48 = vand.u32 2147483648, %v231_v24  ;;  %vm237_vm7 = vweird.f32 %v231_v24  ;;  %v241_v49 = vand.u32 2147483647, %v231_v24 }
 0x191   :  { %v304_v26 = vpop.eup %303  ;;  %v244_v51 = vor.u32 1.1754944e-38, %v243_v48  ;;  %vm242_vm9 = vcmp.eq.f32.partialorder %v241_v49, 8.507059e+37 }
 0x192   :  { %v211_v27 = vadd.f32 1.0, %v304_v26 }
 0x194   :  { %307 = vrcp.f32 %v211_v27  ;;  %v223_v36 = vand.u32 2147483648, %v211_v27  ;;  %v221_v39 = vand.u32 2147483647, %v211_v27  ;;  %vm217_vm3 = vweird.f32 %v211_v27 }
 0x195   :  { %v306_v29 = vpop.eup %305  ;;  %309 = vtanh.f32 %v186_v33 }
 0x196   :  { %v233_v32 = vmul.f32 %v306_v29, %v231_v24  ;;  %v224_v41 = vor.u32 1.1754944e-38, %v223_v36  ;;  %vm222_vm5 = vcmp.eq.f32.partialorder %v221_v39, 8.507059e+37  ;;  %vm238_vm6 = vweird.f32 %v306_v29 }
 0x197   :  { %vm239_vm8 = vmor %vm237_vm7, %vm238_vm6 }
 0x198   :  { %v234_v37 = vsub.f32 1.0, %v233_v32 }
 0x19a   :  { %v308_v31 = vpop.eup %307  ;;  %v235_v42 = vmul.f32 %v306_v29, %v234_v37 }
 0x19b   :  { %v213_v34 = vmul.f32 %v308_v31, %v211_v27  ;;  %vm218_vm2 = vweird.f32 %v308_v31  ;;  %v310_v44 = vpop.eup %309 }
 0x19c   :  { %vm219_vm4 = vmor %vm217_vm3, %vm218_vm2  ;;  %v236_v47 = vadd.f32 %v306_v29, %v235_v42 }
 0x19d   :  { %v214_v35 = vsub.f32 1.0, %v213_v34 }
 0x19e   :  { %v240_v50 = vsel %vm239_vm8, %v306_v29, %v236_v47 }
 0x19f   :  { %v215_v38 = vmul.f32 %v308_v31, %v214_v35  ;;  %v245_v53 = vsel %vm242_vm9, %v244_v51, %v240_v50 }
 0x1a1   :  { %v216_v40 = vadd.f32 %v308_v31, %v215_v38 }
 0x1a3   :  { %v220_v43 = vsel %vm219_vm4, %v308_v31, %v216_v40 }
 0x1a4   :  { %v225_v45 = vsel %vm222_vm5, %v224_v41, %v220_v43 }
 0x1a5   :  { %v247_v46 = vmul.f32 %v310_v44, %v225_v45 }
 0x1a7   :  { %311 = vtanh.f32 %v247_v46 }
 0x1ad   :  { %v312_v52 = vpop.eup %311 }
 0x1ae   :  { %v249_v54 = vmul.f32 %v312_v52, %v245_v53 }
 0x1b0   :  { %286 = vmatmul.f32.vlgmr.msrb.gmra.mxu1 %v249_v54 }
 0x22d   :  { %v287_v56 = vpop.f32.mrf.mxu1 }
 0x22e   :  { %v288_v57 = vadd.f32 %v300_v55, %v287_v56 }
 0x230   :  { %290 = vst.msk [vmem:[%s602_s8] sm:$0xff] %vm67_vm1, %v288_v57 }

</bundles_post_ra>
